<compile_context>
chip_gen: v7x
topology: tpu7x:2x2x1
jax: 0.10.0
libtpu: 0.0.40
codegen_flags: <defaults>
</compile_context>

<pallas_src>
import functools

import jax
import jax.numpy as jnp
from jax import lax
from jax.experimental import pallas as pl
from jax.experimental.pallas import tpu as pltpu


def _contrastive_kernel(im_ref, s_ref, dr_ref, dc_ref, out_ref,
                        acc_ref, rmax_ref, cmax_ref,
                        *, margin, max_violation, n_valid, n_pad, tm, tn):
    i = pl.program_id(0)
    j = pl.program_id(1)
    ni = pl.num_programs(0)
    nj = pl.num_programs(1)

    @pl.when((i == 0) & (j == 0))
    def _init():
        acc_ref[...] = jnp.zeros_like(acc_ref)

    # NT matmul on the MXU: contract the shared D axis directly; operands stay
    # in their input dtype, accumulation is f32.
    scores = lax.dot_general(
        im_ref[...], s_ref[...],
        dimension_numbers=(((1,), (1,)), ((), ())),
        preferred_element_type=jnp.float32)                     # (tm, tn) f32

    # Hinge terms for this tile only.
    cost_s = jnp.maximum(margin + scores - dr_ref[...], 0.0)    # diag as column
    cost_im = jnp.maximum(margin + scores - dc_ref[...], 0.0)   # diag as row

    # Zero the diagonal (and padded rows/cols). Costs are >= 0, so zeroing is
    # correct for both the sum and the max reductions.
    row_g = i * tm + lax.broadcasted_iota(jnp.int32, (tm, tn), 0)
    col_g = j * tn + lax.broadcasted_iota(jnp.int32, (tm, tn), 1)
    mask = row_g == col_g
    if n_valid < n_pad:
        mask = mask | (row_g >= n_valid) | (col_g >= n_valid)
    cost_s = jnp.where(mask, 0.0, cost_s)
    cost_im = jnp.where(mask, 0.0, cost_im)

    if max_violation:
        # Running per-row max across the inner (j) grid axis.
        tile_rmax = jnp.max(cost_s, axis=1, keepdims=True)      # (tm, 1)

        @pl.when(j == 0)
        def _():
            rmax_ref[...] = tile_rmax

        @pl.when(j > 0)
        def _():
            rmax_ref[...] = jnp.maximum(rmax_ref[...], tile_rmax)

        @pl.when(j == nj - 1)
        def _():
            acc_ref[...] += jnp.sum(rmax_ref[...], keepdims=True)

        # Running per-column max across the outer (i) grid axis.
        tile_cmax = jnp.max(cost_im, axis=0, keepdims=True)     # (1, tn)

        @pl.when(i == 0)
        def _():
            cmax_ref[j] = tile_cmax

        @pl.when(i > 0)
        def _():
            cmax_ref[j] = jnp.maximum(cmax_ref[j], tile_cmax)

        @pl.when((i == ni - 1) & (j == nj - 1))
        def _():
            acc_ref[...] += jnp.sum(jnp.sum(cmax_ref[...], axis=0),
                                    axis=-1, keepdims=True)
    else:
        acc_ref[...] += (jnp.sum(cost_s, keepdims=True)
                         + jnp.sum(cost_im, keepdims=True))

    # Output block index is constant across the whole grid, so this buffer
    # stays resident; the value after the final step is what lands in HBM.
    out_ref[...] = acc_ref[...]


def contrastive_loss(im, s, *, margin=0.0, max_violation=False, tile=None):
    """Pallas implementation of ContrastiveLoss.forward.

    im: (N, D) float array, s: (N, D) float array. Returns scalar float32.
    """
    n, d = im.shape
    assert s.shape == (n, d), (im.shape, s.shape)

    if tile is None:
        # 256-aligned tiles fill the v6e/v7x MXU; 128 matches the v5e MXU and
        # is the floor for small batches. Both fit comfortably in the smallest
        # (v7x, 32 MiB scoped) VMEM budget with double-buffered operand tiles.
        tile = 256 if n >= 256 else 128
    tm = tn = tile

    n_pad = pl.cdiv(n, tile) * tile
    ni = n_pad // tm
    nj = n_pad // tn
    pad = n_pad - n

    im_p = jnp.pad(im, ((0, pad), (0, 0))) if pad else im
    s_p = jnp.pad(s, ((0, pad), (0, 0))) if pad else s

    # Diagonal of im @ s.T computed directly as a row-wise dot product
    # (O(N*D) VPU work) — never extracted from the N x N score matrix.
    diag = jnp.sum(im.astype(jnp.float32) * s.astype(jnp.float32), axis=1)
    if pad:
        diag = jnp.pad(diag, (0, pad))
    diag_r = diag.reshape(n_pad, 1)
    diag_c = diag.reshape(1, n_pad)

    kernel = functools.partial(
        _contrastive_kernel,
        margin=float(margin),
        max_violation=bool(max_violation),
        n_valid=n, n_pad=n_pad, tm=tm, tn=tn)

    out = pl.pallas_call(
        kernel,
        out_shape=jax.ShapeDtypeStruct((1, 1), jnp.float32),
        grid_spec=pltpu.PrefetchScalarGridSpec(
            num_scalar_prefetch=0,
            grid=(ni, nj),
            in_specs=[
                pl.BlockSpec((tm, d), lambda i, j: (i, 0)),   # im row block
                pl.BlockSpec((tn, d), lambda i, j: (j, 0)),   # s col block
                pl.BlockSpec((tm, 1), lambda i, j: (i, 0)),   # diag as column
                pl.BlockSpec((1, tn), lambda i, j: (0, j)),   # diag as row
            ],
            out_specs=pl.BlockSpec((1, 1), lambda i, j: (0, 0)),
            scratch_shapes=[
                pltpu.VMEM((1, 1), jnp.float32),       # running scalar loss
                pltpu.VMEM((tm, 1), jnp.float32),      # per-row running max
                pltpu.VMEM((nj, 1, tn), jnp.float32),  # per-col running max
            ],
        ),
        compiler_params=pltpu.CompilerParams(
            dimension_semantics=("arbitrary", "arbitrary")),
    )(im_p, s_p, diag_r, diag_c)
    return out[0, 0]


def _reference(im, s, margin=0.0, max_violation=False):
    scores = im @ s.T
    diag = jnp.diag(scores)[:, None]
    cost_s = jnp.maximum(margin + scores - diag, 0.0)
    cost_im = jnp.maximum(margin + scores - diag.T, 0.0)
    eye = jnp.eye(scores.shape[0], dtype=bool)
    cost_s = jnp.where(eye, 0.0, cost_s)
    cost_im = jnp.where(eye, 0.0, cost_im)
    if max_violation:
        cost_s = cost_s.max(axis=1)
        cost_im = cost_im.max(axis=0)
    return cost_s.sum() + cost_im.sum()


if __name__ == "__main__":
    key = jax.random.PRNGKey(0)
    k_im, k_s = jax.random.split(key)
    N, D = 8, 32  # small: batch=8 pairs, embed dim=32
    im = jax.random.normal(k_im, (N, D), dtype=jnp.float32)
    s = jax.random.normal(k_s, (N, D), dtype=jnp.float32)

    # default config (margin=0, max_violation=False)
    loss = contrastive_loss(im, s, margin=0.0, max_violation=False)
    jax.block_until_ready(loss)
    ref = _reference(im, s, margin=0.0, max_violation=False)
    assert jnp.allclose(loss, ref, rtol=1e-5, atol=1e-5), (loss, ref)

    # also exercise the max_violation branch
    loss_mv = contrastive_loss(im, s, margin=0.2, max_violation=True)
    jax.block_until_ready(loss_mv)
    ref_mv = _reference(im, s, margin=0.2, max_violation=True)
    assert jnp.allclose(loss_mv, ref_mv, rtol=1e-5, atol=1e-5), (loss_mv, ref_mv)

    print("KERNEL_OK")
</pallas_src>

<mosaic_0001>
module attributes {stable_mosaic.version = 11 : i64} {
  func.func @_contrastive_kernel(%arg0: i32, %arg1: i32, %arg2: memref<128x32xf32, #tpu.memory_space<vmem>>, %arg3: memref<128x32xf32, #tpu.memory_space<vmem>>, %arg4: memref<128x1xf32, #tpu.memory_space<vmem>>, %arg5: memref<1x128xf32, #tpu.memory_space<vmem>>, %arg6: memref<1x1xf32, #tpu.memory_space<vmem>>, %arg7: memref<1x1xf32, #tpu.memory_space<vmem>>, %arg8: memref<128x1xf32, #tpu.memory_space<vmem>>, %arg9: memref<1x1x128xf32, #tpu.memory_space<vmem>>) attributes {dimension_semantics = [#tpu.dimension_semantics<arbitrary>, #tpu.dimension_semantics<arbitrary>], iteration_bounds = array<i64: 1, 1>, scalar_prefetch = 0 : i64, scratch_operands = 3 : i64, tpu.core_type = #tpu.core_type<tc>, window_params = [{transform_indices = @transform_0, window_bounds = array<i64: 128, 32>}, {transform_indices = @transform_1, window_bounds = array<i64: 128, 32>}, {transform_indices = @transform_2, window_bounds = array<i64: 128, 1>}, {transform_indices = @transform_3, window_bounds = array<i64: 1, 128>}, {pipeline_mode = #tpu.pipeline_mode<synchronous>, transform_indices = @transform_4, window_bounds = array<i64: 1, 1>}]} {
    %c0_i32 = arith.constant 0 : i32
    %0 = arith.cmpi eq, %arg0, %c0_i32 : i32
    %c0_i32_0 = arith.constant 0 : i32
    %1 = arith.cmpi eq, %arg1, %c0_i32_0 : i32
    %2 = arith.andi %0, %1 : i1
    %3 = arith.extui %2 : i1 to i32
    %c0_i32_1 = arith.constant 0 : i32
    %4 = arith.cmpi ne, %3, %c0_i32_1 : i32
    scf.if %4 {
      %cst_27 = arith.constant 0.000000e+00 : f32
      %57 = vector.broadcast %cst_27 : f32 to vector<1x1xf32>
      %c0_28 = arith.constant 0 : index
      %c0_29 = arith.constant 0 : index
      %58 = vector.load %arg7[%c0_28, %c0_29] : memref<1x1xf32, #tpu.memory_space<vmem>>, vector<1x1xf32>
      tpu.vector_store %arg7[%c0_28, %c0_29], %57 {strides = array<i32>} : memref<1x1xf32, #tpu.memory_space<vmem>>, vector<1x1xf32>,
    } else {
    }
    %c0 = arith.constant 0 : index
    %c0_2 = arith.constant 0 : index
    %5 = vector.load %arg2[%c0, %c0_2] : memref<128x32xf32, #tpu.memory_space<vmem>>, vector<128x32xf32>
    %c0_3 = arith.constant 0 : index
    %c0_4 = arith.constant 0 : index
    %6 = vector.load %arg3[%c0_3, %c0_4] : memref<128x32xf32, #tpu.memory_space<vmem>>, vector<128x32xf32>
    %cst = arith.constant dense<0.000000e+00> : vector<128x128xf32>
    %7 = tpu.matmul %5, %6, %cst {dimension_numbers = #tpu.dot_dimension_numbers<[1], [1], [0], [0], [0, 0, 1, 0], [], []>} : vector<128x32xf32>, vector<128x32xf32>, vector<128x128xf32> -> vector<128x128xf32>
    %cst_5 = arith.constant 0.000000e+00 : f32
    %8 = vector.broadcast %cst_5 : f32 to vector<128x128xf32>
    %9 = arith.addf %8, %7 : vector<128x128xf32>
    %c0_6 = arith.constant 0 : index
    %c0_7 = arith.constant 0 : index
    %10 = vector.load %arg4[%c0_6, %c0_7] : memref<128x1xf32, #tpu.memory_space<vmem>>, vector<128x1xf32>
    %11 = vector.broadcast %10 : vector<128x1xf32> to vector<128x128xf32>
    %12 = arith.subf %9, %11 : vector<128x128xf32>
    %cst_8 = arith.constant 0.000000e+00 : f32
    %13 = vector.broadcast %cst_8 : f32 to vector<128x128xf32>
    %14 = arith.maximumf %12, %13 : vector<128x128xf32>
    %cst_9 = arith.constant 0.000000e+00 : f32
    %15 = vector.broadcast %cst_9 : f32 to vector<128x128xf32>
    %16 = arith.addf %15, %7 : vector<128x128xf32>
    %c0_10 = arith.constant 0 : index
    %c0_11 = arith.constant 0 : index
    %17 = vector.load %arg5[%c0_10, %c0_11] : memref<1x128xf32, #tpu.memory_space<vmem>>, vector<1x128xf32>
    %18 = vector.broadcast %17 : vector<1x128xf32> to vector<128x128xf32>
    %19 = arith.subf %16, %18 : vector<128x128xf32>
    %cst_12 = arith.constant 0.000000e+00 : f32
    %20 = vector.broadcast %cst_12 : f32 to vector<128x128xf32>
    %21 = arith.maximumf %19, %20 : vector<128x128xf32>
    %c128_i32 = arith.constant 128 : i32
    %22 = arith.muli %arg0, %c128_i32 : i32
    %23 = tpu.iota {dimensions = array<i32: 0>} : vector<128x128xi32>
    %24 = vector.broadcast %22 : i32 to vector<128x128xi32>
    %25 = arith.addi %24, %23 : vector<128x128xi32>
    %c128_i32_13 = arith.constant 128 : i32
    %26 = arith.muli %arg1, %c128_i32_13 : i32
    %27 = tpu.iota {dimensions = array<i32: 1>} : vector<128x128xi32>
    %28 = vector.broadcast %26 : i32 to vector<128x128xi32>
    %29 = arith.addi %28, %27 : vector<128x128xi32>
    %30 = arith.cmpi eq, %25, %29 : vector<128x128xi32>
    %c8_i32 = arith.constant 8 : i32
    %31 = vector.broadcast %c8_i32 : i32 to vector<128x128xi32>
    %32 = arith.cmpi sge, %25, %31 : vector<128x128xi32>
    %33 = arith.ori %30, %32 : vector<128x128xi1>
    %c8_i32_14 = arith.constant 8 : i32
    %34 = vector.broadcast %c8_i32_14 : i32 to vector<128x128xi32>
    %35 = arith.cmpi sge, %29, %34 : vector<128x128xi32>
    %36 = arith.ori %33, %35 : vector<128x128xi1>
    %cst_15 = arith.constant 0.000000e+00 : f32
    %37 = vector.broadcast %cst_15 : f32 to vector<128x128xf32>
    %38 = arith.select %36, %37, %14 : vector<128x128xi1>, vector<128x128xf32>
    %cst_16 = arith.constant 0.000000e+00 : f32
    %39 = vector.broadcast %cst_16 : f32 to vector<128x128xf32>
    %40 = arith.select %36, %39, %21 : vector<128x128xi1>, vector<128x128xf32>
    %c0_17 = arith.constant 0 : index
    %c0_18 = arith.constant 0 : index
    %41 = vector.load %arg7[%c0_17, %c0_18] : memref<1x1xf32, #tpu.memory_space<vmem>>, vector<1x1xf32>
    %42 = vector.shape_cast %38 : vector<128x128xf32> to vector<1x128x128xf32>
    %cst_19 = arith.constant dense<0.000000e+00> : vector<1xf32>
    %43 = vector.multi_reduction <add>, %42, %cst_19 [1, 2] : vector<1x128x128xf32> to vector<1xf32>
    %44 = vector.shape_cast %43 : vector<1xf32> to vector<1x1x1xf32>
    %45 = vector.extract %44[0, 0, 0] : f32 from vector<1x1x1xf32>
    %46 = vector.broadcast %45 : f32 to vector<1x1xf32>
    %47 = vector.shape_cast %40 : vector<128x128xf32> to vector<1x128x128xf32>
    %cst_20 = arith.constant dense<0.000000e+00> : vector<1xf32>
    %48 = vector.multi_reduction <add>, %47, %cst_20 [1, 2] : vector<1x128x128xf32> to vector<1xf32>
    %49 = vector.shape_cast %48 : vector<1xf32> to vector<1x1x1xf32>
    %50 = vector.extract %49[0, 0, 0] : f32 from vector<1x1x1xf32>
    %51 = vector.broadcast %50 : f32 to vector<1x1xf32>
    %52 = arith.addf %46, %51 : vector<1x1xf32>
    %53 = arith.addf %41, %52 : vector<1x1xf32>
    %c0_21 = arith.constant 0 : index
    %c0_22 = arith.constant 0 : index
    %54 = vector.load %arg7[%c0_21, %c0_22] : memref<1x1xf32, #tpu.memory_space<vmem>>, vector<1x1xf32>
    tpu.vector_store %arg7[%c0_21, %c0_22], %53 {strides = array<i32>} : memref<1x1xf32, #tpu.memory_space<vmem>>, vector<1x1xf32>,
    %c0_23 = arith.constant 0 : index
    %c0_24 = arith.constant 0 : index
    %55 = vector.load %arg7[%c0_23, %c0_24] : memref<1x1xf32, #tpu.memory_space<vmem>>, vector<1x1xf32>
    %c0_25 = arith.constant 0 : index
    %c0_26 = arith.constant 0 : index
    %56 = vector.load %arg6[%c0_25, %c0_26] : memref<1x1xf32, #tpu.memory_space<vmem>>, vector<1x1xf32>
    tpu.vector_store %arg6[%c0_25, %c0_26], %55 {strides = array<i32>} : memref<1x1xf32, #tpu.memory_space<vmem>>, vector<1x1xf32>,
    return
  }
  func.func @transform_0(%arg0: i32, %arg1: i32) -> (i32, i32) {
    %c0_i32 = arith.constant 0 : i32
    %c0_i32_0 = arith.constant 0 : i32
    return %arg0, %c0_i32 : i32, i32
  }
  func.func @transform_1(%arg0: i32, %arg1: i32) -> (i32, i32) {
    %c0_i32 = arith.constant 0 : i32
    %c0_i32_0 = arith.constant 0 : i32
    return %arg1, %c0_i32 : i32, i32
  }
  func.func @transform_2(%arg0: i32, %arg1: i32) -> (i32, i32) {
    %c0_i32 = arith.constant 0 : i32
    %c0_i32_0 = arith.constant 0 : i32
    return %arg0, %c0_i32 : i32, i32
  }
  func.func @transform_3(%arg0: i32, %arg1: i32) -> (i32, i32) {
    %c0_i32 = arith.constant 0 : i32
    %c0_i32_0 = arith.constant 0 : i32
    return %c0_i32, %arg1 : i32, i32
  }
  func.func @transform_4(%arg0: i32, %arg1: i32) -> (i32, i32) {
    %c0_i32 = arith.constant 0 : i32
    %c0_i32_0 = arith.constant 0 : i32
    %c0_i32_1 = arith.constant 0 : i32
    return %c0_i32, %c0_i32_0 : i32, i32
  }
}

</mosaic_0001>

<bundles_post_ra>
// kernel: tpu_custom_call.1
= control target key start
LH: loop header
LB: loop body
LE: loop exit
PB: predicated region body
PF: predicated region fallthrough
CT: control target
= control target key end

     0   :  { %vm58_vm0 = vcmask 261120   ;;  %v892_v6 = vmov 0   ;;  %s1123_s0 = inlined_call_operand.vmem [shape: f32[128,32], index: 0, kind: input, shape index: {}]   ;;  %s1124_s1 = inlined_call_operand.vmem [shape: f32[128,32], index: 1, kind: input, shape index: {}]   ;;  %s1125_s2 = inlined_call_operand.vmem [shape: f32[128,1], index: 2, kind: input, shape index: {}]   ;;  %s1126_s3 = inlined_call_operand.vmem [shape: f32[1,128], index: 3, kind: input, shape index: {}]   ;;  %s1127_s4 = inlined_call_operand.hbm [shape: f32[1,1], index: 4, kind: output, shape index: {}]  }
   0x1   :  { %v42_v0 = vld [vmem:[%s1124_s1] sm:$0xff]  ;;  %v43_v1 = vld [vmem:[%s1124_s1 + $0x8] sm:$0xff]  ;;  %v44_v2 = vld [vmem:[%s1124_s1 + $0x10] sm:$0xff]  ;;  %867 = vset.pattern.permute.xlu0 %v892_v6 }
   0x2   :  { %v796_v3 = vpack.c.bf16 %v43_v1, %v42_v0  ;;  %vm931_vm1 = vmpackc.low %vm58_vm0, %vm58_vm0  ;;  %v45_v5 = vld [vmem:[%s1124_s1 + $0x18] sm:$0xff]  ;;  %v46_v8 = vld [vmem:[%s1124_s1 + $0x20] sm:$0xff] }
   0x3   :  { %v802_v7 = vpack.c.bf16 %v45_v5, %v44_v2  ;;  %v26_v9 = vld [vmem:[%s1123_s0] sm:$0xff]  ;;  %v47_v10 = vld [vmem:[%s1124_s1 + $0x28] sm:$0xff] }
   0x4   :  { %798 = vmatprep.subr.msk.bf16.mxu0 %vm931_vm1, %v796_v3  ;;  %844 = vmatprep.subr.msk.bf16.mxu1 %vm931_vm1, %v796_v3  ;;  %v300_v11 = vld [vmem:[%s1125_s2] sm:$0xff] }
   0x5   :  { %801 = vmatpush3.bf16.xpose.msk.msra.mxu0 %vm931_vm1, %v796_v3  ;;  %852 = vmatpush3.bf16.xpose.msk.msra.mxu1 %vm931_vm1, %v796_v3  ;;  %v34_v12 = vld [vmem:[%s1123_s0 + $0x40] sm:$0xff] }
   0x6   :  { %804 = vmatprep.subr.msk.bf16.mxu0 %vm931_vm1, %v802_v7  ;;  %845 = vmatprep.subr.msk.bf16.mxu1 %vm931_vm1, %v802_v7 }
   0x7   :  { %772 = vmatprep.mubr.msk.f32.mxu0 %vm58_vm0, %v26_v9  ;;  %318 = vperm.xlu0 %867, %v300_v11  }
   0x8   :  { %784 = vmatprep.mubr.msk.f32.mxu1 %vm58_vm0, %v34_v12 }
   0x9   :  { %9 = vsyncpa [#allocation6], 0  ;;  %v808_v13 = vpack.c.bf16 %v47_v10, %v46_v8  ;;  %v48_v14 = vld [vmem:[%s1124_s1 + $0x30] sm:$0xff]  ;;  %v49_v15 = vld [vmem:[%s1124_s1 + $0x38] sm:$0xff]  ;;  %v468_v43 = vlaneseq  ;;  %vm24_vm5 = vcmask 0   ;;  %v893_v56 = vmov 0.0  }
   0xa   :  { %v814_v16 = vpack.c.bf16 %v49_v15, %v48_v14  ;;  %v50_v17 = vld [vmem:[%s1124_s1 + $0x40] sm:$0xff]  ;;  %v51_v18 = vld [vmem:[%s1124_s1 + $0x48] sm:$0xff]  ;;  %v52_v20 = vld [vmem:[%s1124_s1 + $0x50] sm:$0xff]  ;;  %25 = vst.msk [vmem:[#allocation2] sm:$0x1] %vm24_vm5, %v893_v56  ;;  %s894_s27 = smov [#allocation5]  }
   0xb   :  { %v820_v19 = vpack.c.bf16 %v51_v18, %v50_v17  ;;  %v53_v21 = vld [vmem:[%s1124_s1 + $0x58] sm:$0xff]  ;;  %v54_v23 = vld [vmem:[%s1124_s1 + $0x60] sm:$0xff]  ;;  %v55_v24 = vld [vmem:[%s1124_s1 + $0x68] sm:$0xff]  ;;  %v469_v44 = vshrl.u32 %v468_v43, 7  ;;  %v504_v45 = vand.u32 127, %v468_v43  ;;  %s667_s28 = sshll.u32 %s894_s27, 4  ;;  %s668_s28 = int_to_ptr.vmem [resolvable:$true] %s667_s28 }
   0xc   :  { %v826_v22 = vpack.c.bf16 %v53_v21, %v52_v20  ;;  %v832_v25 = vpack.c.bf16 %v55_v24, %v54_v23  ;;  %v56_v26 = vld [vmem:[%s1124_s1 + $0x70] sm:$0xff]  ;;  %v57_v27 = vld [vmem:[%s1124_s1 + $0x78] sm:$0xff]  ;;  %v27_v29 = vld [vmem:[%s1123_s0 + $0x8] sm:$0xff]  ;;  %s868_s29 = scalar_lea.vmem %s668_s28, 16  ;;  %s872_s30 = scalar_lea.vmem %s668_s28, 32 }
   0xd   :  { %807 = vmatpush3.bf16.xpose.msk.msra.mxu0 %vm931_vm1, %v802_v7  ;;  %853 = vmatpush3.bf16.xpose.msk.msra.mxu1 %vm931_vm1, %v802_v7  ;;  %v838_v28 = vpack.c.bf16 %v57_v27, %v56_v26  ;;  %v35_v30 = vld [vmem:[%s1123_s0 + $0x48] sm:$0xff]  ;;  %v28_v31 = vld [vmem:[%s1123_s0 + $0x10] sm:$0xff]  ;;  %v29_v33 = vld [vmem:[%s1123_s0 + $0x18] sm:$0xff]  ;;  %vm507_vm2 = vcmp.eq.s32.totalorder %v469_v44, %v504_v45  ;;  %vm555_vm3 = vcmp.ge.s32.totalorder %v504_v45, 8  ;;  %p869_p0 = scmp.ne.s32.totalorder %s668_s28, %s868_s29  ;;  %p873_p1 = scmp.lt.s32.totalorder %s668_s28, %s668_s28 }
   0xe   :  { %810 = vmatprep.subr.msk.bf16.mxu0 %vm931_vm1, %v808_v13  ;;  %846 = vmatprep.subr.msk.bf16.mxu1 %vm931_vm1, %v808_v13  ;;  %v36_v32 = vld [vmem:[%s1123_s0 + $0x50] sm:$0xff]  ;;  %v37_v34 = vld [vmem:[%s1123_s0 + $0x58] sm:$0xff]  ;;  %v30_v35 = vld [vmem:[%s1123_s0 + $0x20] sm:$0xff]  ;;  %p874_p2 = scmp.lt.s32.totalorder %s872_s30, %s868_s29 }
   0xf   :  { %v38_v36 = vld [vmem:[%s1123_s0 + $0x60] sm:$0xff]  ;;  %v31_v37 = vld [vmem:[%s1123_s0 + $0x28] sm:$0xff]  ;;  %v32_v39 = vld [vmem:[%s1123_s0 + $0x30] sm:$0xff] }
  0x10   :  { %v39_v38 = vld [vmem:[%s1123_s0 + $0x68] sm:$0xff]  ;;  %v40_v40 = vld [vmem:[%s1123_s0 + $0x70] sm:$0xff]  ;;  %v33_v41 = vld [vmem:[%s1123_s0 + $0x38] sm:$0xff]  ;;  %p875_p3 = por %p874_p2, %p873_p1 }
  0x11   :  { %v41_v42 = vld [vmem:[%s1123_s0 + $0x78] sm:$0xff]  ;;  %v707_v47 = vld [vmem:[%s1126_s3] ss:$0 sm:$0xff]  ;;  %vm556_vm4 = vmor %vm507_vm2, %vm555_vm3 }
  0x12   :  { %p876_p4 = pnand %p875_p3, %p869_p0 }
  0x15   :  { %813 = vmatpush3.bf16.xpose.msk.msra.mxu0 %vm931_vm1, %v808_v13  ;;  %854 = vmatpush3.bf16.xpose.msk.msra.mxu1 %vm931_vm1, %v808_v13 }
  0x16   :  { %816 = vmatprep.subr.msk.bf16.mxu0 %vm931_vm1, %v814_v16  ;;  %847 = vmatprep.subr.msk.bf16.mxu1 %vm931_vm1, %v814_v16 }
  0x1d   :  { %819 = vmatpush3.bf16.xpose.msk.msra.mxu0 %vm931_vm1, %v814_v16  ;;  %855 = vmatpush3.bf16.xpose.msk.msra.mxu1 %vm931_vm1, %v814_v16 }
  0x1e   :  { %822 = vmatprep.subr.msk.bf16.mxu0 %vm931_vm1, %v820_v19  ;;  %848 = vmatprep.subr.msk.bf16.mxu1 %vm931_vm1, %v820_v19 }
  0x25   :  { %825 = vmatpush3.bf16.xpose.msk.msra.mxu0 %vm931_vm1, %v820_v19  ;;  %856 = vmatpush3.bf16.xpose.msk.msra.mxu1 %vm931_vm1, %v820_v19 }
  0x26   :  { %828 = vmatprep.subr.msk.bf16.mxu0 %vm931_vm1, %v826_v22  ;;  %849 = vmatprep.subr.msk.bf16.mxu1 %vm931_vm1, %v826_v22 }
  0x2d   :  { %831 = vmatpush3.bf16.xpose.msk.msra.mxu0 %vm931_vm1, %v826_v22  ;;  %857 = vmatpush3.bf16.xpose.msk.msra.mxu1 %vm931_vm1, %v826_v22  ;;  %v604_v22 = vld [vmem:[#allocation2] sm:$0x1] }
  0x2e   :  { %834 = vmatprep.subr.msk.bf16.mxu0 %vm931_vm1, %v832_v25  ;;  %850 = vmatprep.subr.msk.bf16.mxu1 %vm931_vm1, %v832_v25 }
  0x35   :  { %837 = vmatpush3.bf16.xpose.msk.msra.mxu0 %vm931_vm1, %v832_v25  ;;  %858 = vmatpush3.bf16.xpose.msk.msra.mxu1 %vm931_vm1, %v832_v25 }
  0x36   :  { %840 = vmatprep.subr.msk.bf16.mxu0 %vm931_vm1, %v838_v28  ;;  %851 = vmatprep.subr.msk.bf16.mxu1 %vm931_vm1, %v838_v28 }
  0x3d   :  { %843 = vmatpush3.bf16.xpose.msk.msra.mxu0 %vm931_vm1, %v838_v28  ;;  %859 = vmatpush3.bf16.xpose.msk.msra.mxu1 %vm931_vm1, %v838_v28 }
  0x44   :  { %773 = vmatmul.mubr.msk.f32.vlgmr.msra.gmra.mrb[0].mxu0 %vm58_vm0, %v27_v29  ;;  %785 = vmatmul.mubr.msk.f32.vlgmr.msra.gmra.mrb[0].mxu1 %vm58_vm0, %v35_v30 }
  0x45   :  { %775 = vmatprep.mubr.msk.f32.mxu0 %vm58_vm0, %v28_v31  ;;  %787 = vmatprep.mubr.msk.f32.mxu1 %vm58_vm0, %v36_v32 }
  0x48   :  { %776 = vmatmul.mubr.msk.f32.gmra.mrb[2].mxu0 %vm58_vm0, %v29_v33  ;;  %788 = vmatmul.mubr.msk.f32.gmra.mrb[2].mxu1 %vm58_vm0, %v37_v34 }
  0x49   :  { %778 = vmatprep.mubr.msk.f32.mxu0 %vm58_vm0, %v30_v35  ;;  %790 = vmatprep.mubr.msk.f32.mxu1 %vm58_vm0, %v38_v36 }
  0x4c   :  { %779 = vmatmul.mubr.msk.f32.gmra.mrb[4].mxu0 %vm58_vm0, %v31_v37  ;;  %791 = vmatmul.mubr.msk.f32.gmra.mrb[4].mxu1 %vm58_vm0, %v39_v38 }
  0x4d   :  { %781 = vmatprep.mubr.msk.f32.mxu0 %vm58_vm0, %v32_v39  ;;  %793 = vmatprep.mubr.msk.f32.mxu1 %vm58_vm0, %v40_v40 }
  0x50   :  { %782 = vmatmul.mubr.msk.f32.gmra.mrb[6].mxu0 %vm58_vm0, %v33_v41  ;;  %794 = vmatmul.mubr.msk.f32.gmra.mrb[6].mxu1 %vm58_vm0, %v41_v42 }
  0x86   :  { %v319_v46 = vpop.permute.xlu0 %318 }
 0x117   :  { %v774_v48 = vpop.f32.mrb[0].mxu0  ;;  %v786_v57 = vpop.f32.mrb[0].mxu1 }
 0x118   :  { %v221_v49 = vpop.f32.mrb[1].mxu0  ;;  %v261_v58 = vpop.f32.mrb[1].mxu1 }
 0x119   :  { %v396_v50 = vsub.f32 %v221_v49, %v319_v46  ;;  %v435_v51 = vsub.f32 %v221_v49, %v707_v47 }
 0x11b   :  { %v412_v52 = vmax.f32 %v396_v50, 0.0  ;;  %v451_v53 = vmax.f32 %v435_v51, 0.0  ;;  %v777_v59 = vpop.f32.mrb[2].mxu0  ;;  %v789_v60 = vpop.f32.mrb[2].mxu1 }
 0x11c   :  { %v231_v61 = vpop.f32.mrb[3].mxu0  ;;  %v271_v62 = vpop.f32.mrb[3].mxu1 }
 0x11d   :  { %v588_v54 = vsel %vm556_vm4, 0.0, %v451_v53  ;;  %v572_v55 = vsel %vm556_vm4, 0.0, %v412_v52 }
 0x11e   :  { %645 = vadd.xlane.f32.xlu1 %v588_v54  ;;  %620 = vadd.xlane.f32.xlu0 %v572_v55 }
 0x11f   :  { %v780_v63 = vpop.f32.mrb[4].mxu0  ;;  %v792_v0 = vpop.f32.mrb[4].mxu1 }
 0x120   :  { %v241_v1 = vpop.f32.mrb[5].mxu0  ;;  %v281_v2 = vpop.f32.mrb[5].mxu1 }
 0x123   :  { %v783_v3 = vpop.f32.mrb[6].mxu0  ;;  %v795_v4 = vpop.f32.mrb[6].mxu1 }
 0x124   :  { %v251_v5 = vpop.f32.mrb[7].mxu0  ;;  %v291_v6 = vpop.f32.mrb[7].mxu1 }
 0x1ab   :  { %v646_v7 = vpop.xlane.xlu1 %645  ;;  %v621_v8 = vpop.xlane.xlu0 %620 }
 0x1ac   :  { %v647_v9 = vrot.slane %v646_v7, 4  ;;  %v622_v10 = vrot.slane %v621_v8, 4 }
 0x1ae   :  { %v648_v11 = vadd.f32 %v647_v9, %v646_v7  ;;  %v623_v12 = vadd.f32 %v622_v10, %v621_v8 }
 0x1b0   :  { %v649_v13 = vrot.slane %v648_v11, 2  ;;  %v624_v14 = vrot.slane %v623_v12, 2 }
 0x1b2   :  { %v650_v15 = vadd.f32 %v649_v13, %v648_v11  ;;  %v625_v16 = vadd.f32 %v624_v14, %v623_v12 }
 0x1b4   :  { %v626_v17 = vrot.slane %v625_v16, 1  ;;  %v651_v18 = vrot.slane %v650_v15, 1 }
 0x1b6   :  { %v627_v19 = vadd.f32 %v626_v17, %v625_v16  ;;  %v652_v20 = vadd.f32 %v651_v18, %v650_v15 }
 0x1b8   :  { %860 = vpush %v627_v19 }
 0x1b9   :  { %862 = vpush %v652_v20 }
 0x1e9   :  { %s861_s0 = spop %860 }
 0x1ea   :  { %v629_v21 = vstv %s861_s0  ;;  %s863_s3 = spop %862 }
 0x1eb   :  { %v654_v23 = vstv %s863_s3 }
 0x1ec   :  { %v655_v24 = vadd.f32 %v654_v23, %v629_v21 }
 0x1ee   :  { %v656_v25 = vadd.f32 %v655_v24, %v604_v22 }
 0x1f0   :  { %658 = vst.msk [vmem:[#allocation2] sm:$0x1] %vm24_vm5, %v656_v25 }
 0x1f7   :  { %v659_v26 = vld [vmem:[#allocation2] sm:$0x1] }
 0x1f8   :  { %660 = vst.msk [vmem:[#allocation5] sm:$0x1] %vm24_vm5, %v659_v26 }
 0x1f9   :  { %879 = shalt.err (!%p876_p4)
}
 0x1fa   :  { %s880_s2 = scalar_lea.hbm %s1127_s4, 16 }
 0x1fb   :  { %p881_p5 = scmp.ne.s32.totalorder %s1127_s4, %s880_s2  ;;  %p884_p6 = scmp.lt.u32.totalorder %s880_s2, %s1127_s4 }
 0x1fd   :  { %p886_p7 = pnand %p884_p6, %p881_p5 }
 0x1ff   :  { %889 = shalt.err (!%p886_p7)
}
 0x200   :  { %670 = dma.vmem_to_hbm [thread:$0]  %s668_s28, 16, %s1127_s4, [#allocation6]  }
 0x201   :  { %890 = dma.done.wait [#allocation6], 16  }
 0x202   :  { %891 = vsyncadd [#allocation6], 4294967280 }
 0x203   :  { %674 = vsyncpa [#allocation6], 1 }

</bundles_post_ra>
